<compile_context>
chip_gen: v6e
topology: v6e:2x2x1
jax: 0.10.0
libtpu: 0.0.40
codegen_flags: <defaults>
</compile_context>

<pallas_src>
import functools

import jax
import jax.numpy as jnp
from jax.experimental import pallas as pl
from jax.experimental.pallas import tpu as pltpu


def up2d_kernel(p_ref, wh_ref, wg_ref, bh_ref, bg_ref, o_ref):
    # p_ref : (K, tm)    bf16 im2col patch tile (K sublanes, tm lanes)
    # wh_ref: (half, K)  bf16 weights for the "h" half of the GLU (resident)
    # wg_ref: (half, K)  bf16 weights for the gate half (resident)
    # bh_ref: (half, 1)  f32 bias, h half
    # bg_ref: (half, 1)  f32 bias, gate half
    # o_ref : (half, tm) f32 fused conv+bias+GLU output tile (lane-dense)
    p = p_ref[...]
    h = jnp.dot(wh_ref[...], p, preferred_element_type=jnp.float32) + bh_ref[...]
    g = jnp.dot(wg_ref[...], p, preferred_element_type=jnp.float32) + bg_ref[...]
    o_ref[...] = h * jax.nn.sigmoid(g)


def pixel_shuffle_nchw(x, r):
    n, c, h, w = x.shape
    c2 = c // (r * r)
    x = x.reshape(n, c2, r, r, h, w)
    x = x.transpose(0, 1, 4, 2, 5, 3)
    return x.reshape(n, c2, h * r, w * r)


def _round_up(x, m):
    return (x + m - 1) // m * m


def _choose_tile_m(m, k, half, *, in_bytes=2, acc_bytes=4,
                   vmem_budget_bytes=24 * 1024 * 1024, max_tm=2048):
    """Largest M tile (multiple of 128, <= max_tm) whose double-buffered
    working set fits a VMEM budget safe for v7x (64 MiB physical / 32 MiB
    scoped default), then capped so the grid keeps several parallel steps."""
    resident = 2 * half * k * in_bytes + 2 * half * acc_bytes  # weights + bias

    def fits(tm):
        need = 2 * k * tm * in_bytes + 2 * half * tm * acc_bytes + resident
        return need <= vmem_budget_bytes

    tm = 128
    while tm + 128 <= max_tm and fits(tm + 128):
        tm += 128
    # Aim for >= ~8 grid steps when M allows it (v7x shards 'parallel' axes
    # across its 2 TensorCores; more steps also keeps double-buffering busy).
    tm_for_steps = max(128, _round_up(pl.cdiv(m, 8), 128))
    return max(128, min(tm, tm_for_steps))


@functools.partial(jax.jit, static_argnames=("kernel", "stride", "padding"))
def up2d_forward(x, w, b, *, kernel=3, stride=1, padding=1):
    """x: (N, Cin, H, W) NCHW f32; w: (Cout, Cin, kh, kw); b: (Cout,)."""
    n, cin, hh, ww = x.shape
    cout = w.shape[0]
    kh = kw = kernel
    ho = (hh + 2 * padding - kh) // stride + 1
    wo = (ww + 2 * padding - kw) // stride + 1
    half = cout // 2
    r = 2
    if cout % 2 != 0 or half % (r * r) != 0:
        # GLU <-> PixelShuffle(2) commutation needs the GLU split boundary to
        # land on whole r*r shuffle groups.
        raise ValueError(
            f"out_ch={cout} incompatible with fused GLU+PixelShuffle(2)")

    # --- glue: transposed im2col in bf16 (patches^T: [K, M], K-order ky,kx,cin)
    x_nhwc = jnp.transpose(x, (0, 2, 3, 1)).astype(jnp.bfloat16)
    xp = jnp.pad(x_nhwc, ((0, 0), (padding, padding), (padding, padding), (0, 0)))
    m = n * ho * wo
    rows = []
    for ky in range(kh):
        for kx in range(kw):
            s = xp[:, ky:ky + ho * stride:stride, kx:kx + wo * stride:stride, :]
            rows.append(jnp.transpose(s, (3, 0, 1, 2)).reshape(cin, m))
    patches_t = jnp.concatenate(rows, axis=0)               # (K, M) bf16

    k = kh * kw * cin
    # weight (Cout, Cin, kh, kw) -> (Cout, K) with K-order (ky, kx, cin), then
    # split into the two GLU halves (pure row split, no in-kernel lane slice).
    w_t = jnp.transpose(w, (0, 2, 3, 1)).reshape(cout, k).astype(jnp.bfloat16)
    wh_t = w_t[:half]
    wg_t = w_t[half:]
    bh = b[:half].reshape(half, 1).astype(jnp.float32)
    bg = b[half:].reshape(half, 1).astype(jnp.float32)

    # --- tiling over M: cdiv grid, M padded to a tile multiple; never tm = m
    tm = _choose_tile_m(m, k, half)
    m_pad = _round_up(m, tm)
    if m_pad != m:
        patches_t = jnp.pad(patches_t, ((0, 0), (0, m_pad - m)))
    grid_m = m_pad // tm

    cost = pl.CostEstimate(
        flops=2 * m_pad * k * cout,
        transcendentals=m_pad * half,
        bytes_accessed=(m_pad * k * 2            # patches^T (bf16)
                        + 2 * half * k * 2       # weights (bf16)
                        + 2 * half * 4           # biases (f32)
                        + m_pad * half * 4),     # output (f32)
    )

    fused_t = pl.pallas_call(
        up2d_kernel,
        out_shape=jax.ShapeDtypeStruct((half, m_pad), jnp.float32),
        grid=(grid_m,),
        in_specs=[
            pl.BlockSpec((k, tm), lambda i: (0, i)),      # patches^T tile
            pl.BlockSpec((half, k), lambda i: (0, 0)),    # w_h   (resident)
            pl.BlockSpec((half, k), lambda i: (0, 0)),    # w_gate (resident)
            pl.BlockSpec((half, 1), lambda i: (0, 0)),    # bias_h
            pl.BlockSpec((half, 1), lambda i: (0, 0)),    # bias_gate
        ],
        out_specs=pl.BlockSpec((half, tm), lambda i: (0, i)),
        compiler_params=pltpu.CompilerParams(
            dimension_semantics=("parallel",),
            vmem_limit_bytes=32 * 1024 * 1024,
        ),
        cost_estimate=cost,
    )(patches_t, wh_t, wg_t, bh, bg)

    # --- glue: back to NCHW, then PixelShuffle(2) (GLU already applied) ---
    out_nchw = fused_t[:, :m].T.reshape(n, ho, wo, half).transpose(0, 3, 1, 2)
    return pixel_shuffle_nchw(out_nchw, r)


def up2d_reference(x, w, b, *, stride=1, padding=1):
    conv = jax.lax.conv_general_dilated(
        x, w, window_strides=(stride, stride),
        padding=((padding, padding), (padding, padding)),
        dimension_numbers=("NCHW", "OIHW", "NCHW"),
    ) + b.reshape(1, -1, 1, 1)
    ps = pixel_shuffle_nchw(conv, 2)
    h, gate = jnp.split(ps, 2, axis=1)
    return h * jax.nn.sigmoid(gate)


if __name__ == "__main__":
    # Module config: Up2d(in_ch=4, out_ch=16, kernel=3, stride=1, padding=1)
    N, CIN, H, W = 2, 4, 16, 16
    COUT, K, S, P = 16, 3, 1, 1

    key = jax.random.PRNGKey(0)
    kx_, kw_, kb_ = jax.random.split(key, 3)
    x = jax.random.normal(kx_, (N, CIN, H, W), dtype=jnp.float32)
    # init.normal_(weight, 0.0, 0.02); deterministic synthetic bias
    w = 0.02 * jax.random.normal(kw_, (COUT, CIN, K, K), dtype=jnp.float32)
    b = 0.01 * jax.random.normal(kb_, (COUT,), dtype=jnp.float32)

    out = up2d_forward(x, w, b, kernel=K, stride=S, padding=P)
    out = jax.block_until_ready(out)

    ref = up2d_reference(x, w, b, stride=S, padding=P)
    assert out.shape == (N, COUT // 8, 2 * H, 2 * W), out.shape
    max_err = float(jnp.max(jnp.abs(out - ref)))
    # bf16 operands on the MXU with f32 accumulation: allow a small tolerance.
    assert max_err < 2e-2, f"mismatch vs reference, max abs err {max_err}"

    print("KERNEL_OK")
</pallas_src>

<mosaic_0001>
module attributes {stable_mosaic.version = 11 : i64} {
  func.func @up2d_kernel(%arg0: i32, %arg1: memref<36x128xbf16, #tpu.memory_space<vmem>>, %arg2: memref<8x36xbf16, #tpu.memory_space<vmem>>, %arg3: memref<8x36xbf16, #tpu.memory_space<vmem>>, %arg4: memref<8x1xf32, #tpu.memory_space<vmem>>, %arg5: memref<8x1xf32, #tpu.memory_space<vmem>>, %arg6: memref<8x128xf32, #tpu.memory_space<vmem>>) attributes {dimension_semantics = [#tpu.dimension_semantics<parallel>], iteration_bounds = array<i64: 4>, scalar_prefetch = 0 : i64, scratch_operands = 0 : i64, tpu.core_type = #tpu.core_type<tc>, window_params = [{transform_indices = @transform_0, window_bounds = array<i64: 36, 128>}, {pipeline_mode = #tpu.pipeline_mode<synchronous>, transform_indices = @transform_1, window_bounds = array<i64: 8, 36>}, {pipeline_mode = #tpu.pipeline_mode<synchronous>, transform_indices = @transform_2, window_bounds = array<i64: 8, 36>}, {pipeline_mode = #tpu.pipeline_mode<synchronous>, transform_indices = @transform_3, window_bounds = array<i64: 8, 1>}, {pipeline_mode = #tpu.pipeline_mode<synchronous>, transform_indices = @transform_4, window_bounds = array<i64: 8, 1>}, {transform_indices = @transform_5, window_bounds = array<i64: 8, 128>}]} {
    %c0 = arith.constant 0 : index
    %c0_0 = arith.constant 0 : index
    %0 = vector.load %arg1[%c0, %c0_0] : memref<36x128xbf16, #tpu.memory_space<vmem>>, vector<36x128xbf16>
    %c0_1 = arith.constant 0 : index
    %c0_2 = arith.constant 0 : index
    %1 = vector.load %arg2[%c0_1, %c0_2] : memref<8x36xbf16, #tpu.memory_space<vmem>>, vector<8x36xbf16>
    %cst = arith.constant dense<0.000000e+00> : vector<8x128xf32>
    %2 = tpu.matmul %1, %0, %cst {dimension_numbers = #tpu.dot_dimension_numbers<[1], [0], [0], [1], [0, 0, 1, 1], [], []>} : vector<8x36xbf16>, vector<36x128xbf16>, vector<8x128xf32> -> vector<8x128xf32>
    %c0_3 = arith.constant 0 : index
    %c0_4 = arith.constant 0 : index
    %3 = vector.load %arg4[%c0_3, %c0_4] : memref<8x1xf32, #tpu.memory_space<vmem>>, vector<8x1xf32>
    %4 = vector.broadcast %3 : vector<8x1xf32> to vector<8x128xf32>
    %5 = arith.addf %2, %4 : vector<8x128xf32>
    %c0_5 = arith.constant 0 : index
    %c0_6 = arith.constant 0 : index
    %6 = vector.load %arg3[%c0_5, %c0_6] : memref<8x36xbf16, #tpu.memory_space<vmem>>, vector<8x36xbf16>
    %cst_7 = arith.constant dense<0.000000e+00> : vector<8x128xf32>
    %7 = tpu.matmul %6, %0, %cst_7 {dimension_numbers = #tpu.dot_dimension_numbers<[1], [0], [0], [1], [0, 0, 1, 1], [], []>} : vector<8x36xbf16>, vector<36x128xbf16>, vector<8x128xf32> -> vector<8x128xf32>
    %c0_8 = arith.constant 0 : index
    %c0_9 = arith.constant 0 : index
    %8 = vector.load %arg5[%c0_8, %c0_9] : memref<8x1xf32, #tpu.memory_space<vmem>>, vector<8x1xf32>
    %9 = vector.broadcast %8 : vector<8x1xf32> to vector<8x128xf32>
    %10 = arith.addf %7, %9 : vector<8x128xf32>
    %11 = arith.negf %10 : vector<8x128xf32>
    %12 = math.exp %11 : vector<8x128xf32>
    %cst_10 = arith.constant 1.000000e+00 : f32
    %13 = vector.broadcast %cst_10 : f32 to vector<8x128xf32>
    %14 = arith.addf %13, %12 : vector<8x128xf32>
    %15 = arith.divf %13, %14 : vector<8x128xf32>
    %16 = arith.mulf %5, %15 : vector<8x128xf32>
    %c0_11 = arith.constant 0 : index
    %c0_12 = arith.constant 0 : index
    %17 = vector.load %arg6[%c0_11, %c0_12] : memref<8x128xf32, #tpu.memory_space<vmem>>, vector<8x128xf32>
    tpu.vector_store %arg6[%c0_11, %c0_12], %16 {strides = array<i32>} : memref<8x128xf32, #tpu.memory_space<vmem>>, vector<8x128xf32>,
    return
  }
  func.func @transform_0(%arg0: i32) -> (i32, i32) {
    %c0_i32 = arith.constant 0 : i32
    %c0_i32_0 = arith.constant 0 : i32
    return %c0_i32, %arg0 : i32, i32
  }
  func.func @transform_1(%arg0: i32) -> (i32, i32) {
    %c0_i32 = arith.constant 0 : i32
    %c0_i32_0 = arith.constant 0 : i32
    %c0_i32_1 = arith.constant 0 : i32
    return %c0_i32, %c0_i32_0 : i32, i32
  }
  func.func @transform_2(%arg0: i32) -> (i32, i32) {
    %c0_i32 = arith.constant 0 : i32
    %c0_i32_0 = arith.constant 0 : i32
    %c0_i32_1 = arith.constant 0 : i32
    return %c0_i32, %c0_i32_0 : i32, i32
  }
  func.func @transform_3(%arg0: i32) -> (i32, i32) {
    %c0_i32 = arith.constant 0 : i32
    %c0_i32_0 = arith.constant 0 : i32
    %c0_i32_1 = arith.constant 0 : i32
    return %c0_i32, %c0_i32_0 : i32, i32
  }
  func.func @transform_4(%arg0: i32) -> (i32, i32) {
    %c0_i32 = arith.constant 0 : i32
    %c0_i32_0 = arith.constant 0 : i32
    %c0_i32_1 = arith.constant 0 : i32
    return %c0_i32, %c0_i32_0 : i32, i32
  }
  func.func @transform_5(%arg0: i32) -> (i32, i32) {
    %c0_i32 = arith.constant 0 : i32
    %c0_i32_0 = arith.constant 0 : i32
    return %c0_i32, %arg0 : i32, i32
  }
}

</mosaic_0001>

<bundles_post_ra>
// kernel: up2d_forward.1
= control target key start
LH: loop header
LB: loop body
LE: loop exit
PB: predicated region body
PF: predicated region fallthrough
CT: control target
= control target key end

     0   :  { %s612_s18 = smov 0   ;;  %s614_s19 = smov 0   ;;  %s678_s0 = inlined_call_operand.vmem [shape: bf16[36,512], index: 0, kind: input, shape index: {}]   ;;  %s679_s1 = inlined_call_operand.vmem [shape: bf16[8,36], index: 1, kind: input, shape index: {}]   ;;  %s680_s2 = inlined_call_operand.vmem [shape: bf16[8,36], index: 2, kind: input, shape index: {}]   ;;  %s681_s3 = inlined_call_operand.vmem [shape: f32[8,1], index: 3, kind: input, shape index: {}]   ;;  %s682_s4 = inlined_call_operand.vmem [shape: f32[8,1], index: 4, kind: input, shape index: {}]   ;;  %s683_s5 = inlined_call_operand.vmem [shape: f32[8,512], index: 5, kind: output, shape index: {}]  }
   0x1   :  { %s616_s20 = smov 0  }
   0x2 LB: > { %s475_s21 = sadd.s32 4294967295, %s577_s20   ;;  %s629_s22 = sadd.s32 1, %s577_s20   ;;  %s577_s20 = sphi %s616_s20, %s686_s20   ;;  %s573_s19 = sphi %s614_s19, %s685_s19   ;;  %s569_s18 = sphi %s612_s18, %s684_s18  }
   0x3   : > { %s19_s23 = ssub.s32 %s577_s20, %s629_s22  ;;  %s22_s24 = sadd.s32 1, %s573_s19 }
   0x4   : > { %p20_p0 = scmp.eq.s32.totalorder %s19_s23, 0  ;;  %p29_p1 = scmp.ne.s32.totalorder %s573_s19, %s569_s18 }
   0x5   : > { %p30_p2 = scmp.eq.s32.totalorder %s577_s20, 0  ;;  %p478_p4 = scmp.ge.s32.totalorder %s577_s20, 4 }
   0x6   : > { %s638_s25 = scalar_select %p20_p0, %s573_s19, %s22_s24  }
   0x7   : > { %p31_p3 = por %p30_p2, %p29_p1  ;;  %177 = sbr.rel (%p478_p4) target bundleno = 19 (0x13), region = 32 }
   0xc   : > { %180 = sbr.rel (!%p31_p3) target bundleno = 19 (0x13), region = 36  ;;  %s182_s26 = sand.u32 (%p31_p3), 1, %s573_s19  }
   0xd   : > { %s479_s27 = sshll.u32 (%p31_p3), %s577_s20, 2  ;;  %s518_s28 = smul.u32 (%p31_p3), 20, %s182_s26 }
   0xe   : > { %s186_s6 = scalar_lea.vmem (%p31_p3), %s678_s0, %s479_s27 }
   0xf   : > { %v203_v0 = vld [vmem:[%s186_s6] sm:$0xf] (%p31_p3)  ;;  %v205_v1 = vld [vmem:[%s186_s6 + $0x10] sm:$0xf] (%p31_p3)  ;;  %s184_s7 = scalar_lea.vmem (%p31_p3), [#allocation2], %s518_s28 }
  0x10   : > { %v207_v2 = vld [vmem:[%s186_s6 + $0x20] sm:$0xf] (%p31_p3)  ;;  %v209_v3 = vld [vmem:[%s186_s6 + $0x30] sm:$0xf] (%p31_p3)  ;;  %204 = vst [vmem:[%s184_s7] sm:$0xf] (%p31_p3), %v203_v0 }
  0x11   : > { %v211_v4 = vld [vmem:[%s186_s6 + $0x40] sm:$0xf]  ;;  %206 = vst [vmem:[%s184_s7 + $0x4] sm:$0xf] %v205_v1  ;;  %208 = vst [vmem:[%s184_s7 + $0x8] sm:$0xf] %v207_v2 }
  0x12   : > { %210 = vst [vmem:[%s184_s7 + $0xc] sm:$0xf] %v209_v3  ;;  %212 = vst [vmem:[%s184_s7 + $0x10] sm:$0xf] %v211_v4 }
  0x13 PF: > { %p480_p5 = scmp.ge.s32.totalorder %s577_s20, 1  ;;  %p245_p6 = scmp.lt.s32.totalorder %s577_s20, 5 }
  0x15   : > { %p246_p7 = pnand %p480_p5, %p245_p6 }
  0x16   : > { %s252_s8 = sand.u32 (!%p246_p7), 1, %s569_s18   ;;  %p278_p8 = scmp.lt.s32.totalorder (!%p246_p7), %s475_s21, 3 }
  0x17   : > { %249 = sbr.rel (%p246_p7) target bundleno = 273 (0x111), region = 77 }
  0x18   : > { %s519_s9 = smul.u32 (!%p246_p7), 20, %s252_s8 }
  0x1a   : > { %s254_s12 = scalar_lea.vmem (!%p246_p7), [#allocation2], %s519_s9 }
  0x1c   : > { %v579_v5 = vmov 0.0   ;;  %v359_v6 = vld [vmem:[%s682_s4] sm:$0xff]  ;;  %vm580_vm0 = vmmov 0   ;;  %vm314_vm1 = vcmask 1041408   ;;  %v581_v7 = vmov 0   ;;  %s688_s21 = smov (!%p278_p8, %s475_s21), 3 }
  0x1d   : > { %498 = vmatprep.subr.bf16.mxu0 %v579_v5  ;;  %508 = vmatprep.subr.bf16.mxu1 %v579_v5  ;;  %v548_v8 = vld [vmem:[%s254_s12 + $0x10] ss:$0 sps:$4 sm:$0x33]   ;;  %v549_v11 = vld [vmem:[%s254_s12 + $0x8] sm:$0xff]   ;;  %v550_v12 = vld [vmem:[%s254_s12] sm:$0xff]   ;;  %vm310_vm2 = vcmask 293888  }
  0x1e   : > { %504 = vmatprep.mubr.msk.bf16.mxu0 %vm580_vm0, %v579_v5  ;;  %514 = vmatprep.mubr.msk.bf16.mxu1 %vm580_vm0, %v579_v5  ;;  %v316_v9 = vsel %vm314_vm1, %v548_v8, 0  ;;  %v289_v10 = vld [vmem:[%s681_s3] sm:$0xff]  ;;  %s481_s23 = sshll.u32 %s688_s21, 3 }
  0x1f   : > { %547 = vset.pattern.permute.xlu0 %v581_v7  ;;  %499 = vmatpush3.bf16.msra.mxu0 %v316_v9  ;;  %v288_v13 = vld [vmem:[%s679_s1] sm:$0xf]  ;;  %s281_s27 = scalar_lea.vmem %s683_s5, %s481_s23 }
  0x20   : > { %362 = vperm.xlu0 %547, %v359_v6   ;;  %509 = vmatpush3.bf16.msra.mxu1 %v316_v9  ;;  %v358_v14 = vld [vmem:[%s680_s2] sm:$0xf] }
  0x21   : > { %500 = vmatprep.subr.bf16.mxu0 %v579_v5  ;;  %510 = vmatprep.subr.bf16.mxu1 %v579_v5 }
  0x23   : > { %501 = vmatpush3.bf16.msra.mxu0 %v549_v11 }
  0x24   : > { %292 = vperm.xlu0 %547, %v289_v10   ;;  %511 = vmatpush3.bf16.msra.mxu1 %v549_v11 }
  0x25   : > { %502 = vmatprep.subr.bf16.mxu0 %v579_v5  ;;  %512 = vmatprep.subr.bf16.mxu1 %v579_v5 }
  0x27   : > { %503 = vmatpush3.bf16.msra.mxu0 %v550_v12 }
  0x28   : > { %513 = vmatpush3.bf16.msra.mxu1 %v550_v12 }
  0x2a   : > { %505 = vmatmul.mubr.msk.bf16.vlgmr.msra.gmra.mxu0 %vm310_vm2, %v288_v13 }
  0x2b   : > { %515 = vmatmul.mubr.msk.bf16.vlgmr.msra.gmra.mxu1 %vm310_vm2, %v358_v14 }
  0x9b   : > { %v363_v15 = vpop.permute.xlu0 %362 }
  0x9f   : > { %v293_v28 = vpop.permute.xlu0 %292 }
  0xea   : > { %v352_v16 = vpop.f32.mrf.mxu0 }
  0xeb   : > { %v402_v17 = vpop.f32.mrf.mxu1  ;;  %v353_v29 = vadd.f32 %v352_v16, %v293_v28 }
  0xec   : > { %v403_v18 = vadd.f32 %v402_v17, %v363_v15  ;;  %v506_v20 = vpop.f32.mrf.mxu0 }
  0xed   : > { %v516_v19 = vpop.f32.mrf.mxu1 }
  0xee   : > { %v487_v21 = vmul.f32 -1.442695, %v403_v18  ;;  %v355_v23 = vpop.f32.mrf.mxu0 }
  0xef   : > { %v405_v22 = vpop.f32.mrf.mxu1 }
  0xf0   : > { %551 = vpow2.f32 %v487_v21  ;;  %v507_v25 = vpop.f32.mrf.mxu0 }
  0xf1   : > { %v517_v24 = vpop.f32.mrf.mxu1 }
  0xfd   : > { %v552_v26 = vpop.eup %551 }
  0xfe   : > { %v411_v27 = vadd.f32 1.0, %v552_v26 }
 0x100   : > { %553 = vrcp.f32 %v411_v27 }
 0x10d   : > { %v554_v30 = vpop.eup %553 }
 0x10e   : > { %v414_v31 = vmul.f32 %v554_v30, %v353_v29 }
 0x110   : > { %415 = vst [vmem:[%s281_s27] sm:$0xff] %v414_v31 }
 0x111 PF: > { %p12_p9 = scmp.ge.s32.totalorder %s629_s22, 6   ;;  %s684_s18 = smov %s573_s19 }
 0x112   : > { %s685_s19 = smov %s638_s25  ;;  %s686_s20 = smov %s629_s22 }
 0x113   :  { %14 = sbr.rel (!%p12_p9) target bundleno = 2 (0x2), region = 116 }

</bundles_post_ra>
